<compile_context>
chip_gen: v6e
topology: v6e:2x2x1
jax: 0.10.0
libtpu: 0.0.40
codegen_flags: <defaults>
</compile_context>

<pallas_src>
import jax
import jax.numpy as jnp
from jax.experimental import pallas as pl
from jax.experimental.pallas import tpu as pltpu


def _round_up(n, m):
    return ((n + m - 1) // m) * m


def _ffn_kernel(x_ref, w1_ref, b1_ref, w2_ref, b2_ref, o_ref):
    # x_ref : (TILE_M, Dm)   w1_ref: (Dm, Dh)   b1_ref: (1, Dh)
    # w2_ref: (Dh, Dm)       b2_ref: (1, Dm)    o_ref : (TILE_M, Dm)
    x = x_ref[...]
    b1 = b1_ref[...]                      # load once, keep in vregs
    b2 = b2_ref[...]
    h = jnp.dot(x, w1_ref[...], preferred_element_type=jnp.float32) + b1
    h = jnp.maximum(h, 0.0)               # ReLU epilogue in f32 (v5e-safe)
    # TODO(synk): nn.Dropout is identity in eval mode; training-mode random masking
    # (pltpu.prng_seed / prng_random_bits) is intentionally not applied here.
    y = jnp.dot(h.astype(w2_ref.dtype), w2_ref[...],
                preferred_element_type=jnp.float32) + b2
    o_ref[...] = y.astype(o_ref.dtype)


def feed_forward(x, w1_io, b1, w2_io, b2):
    """Eval-mode FeedForward: linear2(dropout(relu(linear1(x)))).

    x     : [B, S, d_model]
    w1_io : [d_model, d_hidden]  (pre-transposed nn.Linear weight, done once at load)
    b1    : [d_hidden]
    w2_io : [d_hidden, d_model]  (pre-transposed)
    b2    : [d_model]
    """
    B, S, d_model = x.shape
    d_hidden = w1_io.shape[1]
    assert w1_io.shape == (d_model, d_hidden)
    assert w2_io.shape == (d_hidden, d_model)

    rows = B * S
    # Lane-dense padding: last dims -> multiples of 128.
    dm_p = _round_up(d_model, 128)
    dh_p = _round_up(d_hidden, 128)

    itemsize = jnp.dtype(x.dtype).itemsize

    def vmem_working_set(tm):
        return (2 * 2 * tm * dm_p * itemsize                 # x + out tiles, double-buffered
                + 2 * (dm_p * dh_p + dh_p * dm_p) * itemsize  # resident weights (2 bufs each)
                + 2 * (dh_p + dm_p) * itemsize                # biases
                + tm * dh_p * 4)                              # f32 intermediate h

    # 256-aligned row tile (MXU-friendly on all generations); shrink only if the
    # working set would blow a budget with headroom under v7x's 64 MiB VMEM.
    tile_m = 256
    VMEM_BUDGET = 48 * 1024 * 1024
    while tile_m > 8 and vmem_working_set(tile_m) > VMEM_BUDGET:
        tile_m //= 2

    rows_p = _round_up(rows, tile_m)
    num_tiles = rows_p // tile_m

    # Zero-pad (in the wrapper) to the lane/tile-aligned shapes; padding contributes
    # zeros through both linears, and padded rows/cols are sliced off at the end.
    x2d = jnp.pad(x.reshape(rows, d_model),
                  ((0, rows_p - rows), (0, dm_p - d_model)))
    w1_p = jnp.pad(w1_io, ((0, dm_p - d_model), (0, dh_p - d_hidden)))
    b1_p = jnp.pad(b1, (0, dh_p - d_hidden)).reshape(1, dh_p)
    w2_p = jnp.pad(w2_io, ((0, dh_p - d_hidden), (0, dm_p - d_model)))
    b2_p = jnp.pad(b2, (0, dm_p - d_model)).reshape(1, dm_p)

    vmem_limit = int(min(max(2 * vmem_working_set(tile_m), 32 * 1024 * 1024),
                         64 * 1024 * 1024))

    out = pl.pallas_call(
        _ffn_kernel,
        out_shape=jax.ShapeDtypeStruct((rows_p, dm_p), x.dtype),
        grid_spec=pltpu.PrefetchScalarGridSpec(
            num_scalar_prefetch=0,
            grid=(num_tiles,),
            in_specs=[
                pl.BlockSpec((tile_m, dm_p), lambda i: (i, 0)),   # x tile (pipelined)
                pl.BlockSpec((dm_p, dh_p), lambda i: (0, 0)),     # w1 (VMEM-resident)
                pl.BlockSpec((1, dh_p), lambda i: (0, 0)),        # b1
                pl.BlockSpec((dh_p, dm_p), lambda i: (0, 0)),     # w2 (VMEM-resident)
                pl.BlockSpec((1, dm_p), lambda i: (0, 0)),        # b2
            ],
            out_specs=pl.BlockSpec((tile_m, dm_p), lambda i: (i, 0)),
        ),
        compiler_params=pltpu.CompilerParams(
            dimension_semantics=("parallel",),     # independent row tiles -> megacore on v7x
            vmem_limit_bytes=vmem_limit,
        ),
    )(x2d, w1_p, b1_p, w2_p, b2_p)

    return out[:rows, :d_model].reshape(B, S, d_model)


if __name__ == "__main__":
    key = jax.random.PRNGKey(0)

    def init_params(k, d_model, d_hidden):
        kw1, kb1, kw2, kb2 = jax.random.split(k, 4)
        lim1 = 1.0 / (d_model ** 0.5)
        lim2 = 1.0 / (d_hidden ** 0.5)
        # Built directly in (in, out) layout == pre-transposed once at model-load time.
        w1_io = jax.random.uniform(kw1, (d_model, d_hidden), jnp.float32, -lim1, lim1)
        b1 = jax.random.uniform(kb1, (d_hidden,), jnp.float32, -lim1, lim1)
        w2_io = jax.random.uniform(kw2, (d_hidden, d_model), jnp.float32, -lim2, lim2)
        b2 = jax.random.uniform(kb2, (d_model,), jnp.float32, -lim2, lim2)
        return w1_io, b1, w2_io, b2

    def ref_ffn(x, w1_io, b1, w2_io, b2):
        return jnp.maximum(x @ w1_io + b1, 0.0) @ w2_io + b2

    ok = True

    # Case 1: small shapes consistent with the module (exercises the lane-padding path).
    k1, k2, key = jax.random.split(key, 3)
    B, S, d_model, d_hidden = 2, 8, 32, 64
    x = jax.random.normal(k1, (B, S, d_model), dtype=jnp.float32)
    params = init_params(k2, d_model, d_hidden)
    out = jax.block_until_ready(feed_forward(x, *params))
    assert out.shape == (B, S, d_model)
    ok = ok and bool(jnp.allclose(out, ref_ffn(x, *params), atol=1e-5, rtol=1e-5))

    # Case 2: lane-aligned shapes with multiple row tiles (exercises the pipelined grid).
    k1, k2, key = jax.random.split(key, 3)
    B, S, d_model, d_hidden = 2, 512, 128, 256
    x = jax.random.normal(k1, (B, S, d_model), dtype=jnp.float32)
    params = init_params(k2, d_model, d_hidden)
    out = jax.block_until_ready(feed_forward(x, *params))
    assert out.shape == (B, S, d_model)
    ok = ok and bool(jnp.allclose(out, ref_ffn(x, *params), atol=2e-4, rtol=2e-4))

    if not ok:
        raise SystemExit("mismatch vs reference")
    print("KERNEL_OK")
</pallas_src>

<mosaic_0001>
module attributes {stable_mosaic.version = 11 : i64} {
  func.func @_ffn_kernel(%arg0: i32, %arg1: memref<256x128xf32, #tpu.memory_space<vmem>>, %arg2: memref<128x128xf32, #tpu.memory_space<vmem>>, %arg3: memref<1x128xf32, #tpu.memory_space<vmem>>, %arg4: memref<128x128xf32, #tpu.memory_space<vmem>>, %arg5: memref<1x128xf32, #tpu.memory_space<vmem>>, %arg6: memref<256x128xf32, #tpu.memory_space<vmem>>) attributes {dimension_semantics = [#tpu.dimension_semantics<parallel>], iteration_bounds = array<i64: 1>, scalar_prefetch = 0 : i64, scratch_operands = 0 : i64, tpu.core_type = #tpu.core_type<tc>, window_params = [{transform_indices = @transform_0, window_bounds = array<i64: 256, 128>}, {pipeline_mode = #tpu.pipeline_mode<synchronous>, transform_indices = @transform_1, window_bounds = array<i64: 128, 128>}, {pipeline_mode = #tpu.pipeline_mode<synchronous>, transform_indices = @transform_2, window_bounds = array<i64: 1, 128>}, {pipeline_mode = #tpu.pipeline_mode<synchronous>, transform_indices = @transform_3, window_bounds = array<i64: 128, 128>}, {pipeline_mode = #tpu.pipeline_mode<synchronous>, transform_indices = @transform_4, window_bounds = array<i64: 1, 128>}, {transform_indices = @transform_5, window_bounds = array<i64: 256, 128>}]} {
    %c0 = arith.constant 0 : index
    %c0_0 = arith.constant 0 : index
    %0 = vector.load %arg1[%c0, %c0_0] : memref<256x128xf32, #tpu.memory_space<vmem>>, vector<256x128xf32>
    %c0_1 = arith.constant 0 : index
    %c0_2 = arith.constant 0 : index
    %1 = vector.load %arg3[%c0_1, %c0_2] : memref<1x128xf32, #tpu.memory_space<vmem>>, vector<1x128xf32>
    %c0_3 = arith.constant 0 : index
    %c0_4 = arith.constant 0 : index
    %2 = vector.load %arg5[%c0_3, %c0_4] : memref<1x128xf32, #tpu.memory_space<vmem>>, vector<1x128xf32>
    %c0_5 = arith.constant 0 : index
    %c0_6 = arith.constant 0 : index
    %3 = vector.load %arg2[%c0_5, %c0_6] : memref<128x128xf32, #tpu.memory_space<vmem>>, vector<128x128xf32>
    %cst = arith.constant dense<0.000000e+00> : vector<256x128xf32>
    %4 = tpu.matmul %0, %3, %cst {dimension_numbers = #tpu.dot_dimension_numbers<[1], [0], [0], [1], [0, 0, 1, 1], [], []>} : vector<256x128xf32>, vector<128x128xf32>, vector<256x128xf32> -> vector<256x128xf32>
    %5 = vector.broadcast %1 : vector<1x128xf32> to vector<256x128xf32>
    %6 = arith.addf %4, %5 : vector<256x128xf32>
    %cst_7 = arith.constant 0.000000e+00 : f32
    %7 = vector.broadcast %cst_7 : f32 to vector<256x128xf32>
    %8 = arith.maximumf %6, %7 : vector<256x128xf32>
    %c0_8 = arith.constant 0 : index
    %c0_9 = arith.constant 0 : index
    %9 = vector.load %arg4[%c0_8, %c0_9] : memref<128x128xf32, #tpu.memory_space<vmem>>, vector<128x128xf32>
    %cst_10 = arith.constant dense<0.000000e+00> : vector<256x128xf32>
    %10 = tpu.matmul %8, %9, %cst_10 {dimension_numbers = #tpu.dot_dimension_numbers<[1], [0], [0], [1], [0, 0, 1, 1], [], []>} : vector<256x128xf32>, vector<128x128xf32>, vector<256x128xf32> -> vector<256x128xf32>
    %11 = vector.broadcast %2 : vector<1x128xf32> to vector<256x128xf32>
    %12 = arith.addf %10, %11 : vector<256x128xf32>
    %c0_11 = arith.constant 0 : index
    %c0_12 = arith.constant 0 : index
    %13 = vector.load %arg6[%c0_11, %c0_12] : memref<256x128xf32, #tpu.memory_space<vmem>>, vector<256x128xf32>
    tpu.vector_store %arg6[%c0_11, %c0_12], %12 {strides = array<i32>} : memref<256x128xf32, #tpu.memory_space<vmem>>, vector<256x128xf32>,
    return
  }
  func.func @transform_0(%arg0: i32) -> (i32, i32) {
    %c0_i32 = arith.constant 0 : i32
    %c0_i32_0 = arith.constant 0 : i32
    return %arg0, %c0_i32 : i32, i32
  }
  func.func @transform_1(%arg0: i32) -> (i32, i32) {
    %c0_i32 = arith.constant 0 : i32
    %c0_i32_0 = arith.constant 0 : i32
    %c0_i32_1 = arith.constant 0 : i32
    return %c0_i32, %c0_i32_0 : i32, i32
  }
  func.func @transform_2(%arg0: i32) -> (i32, i32) {
    %c0_i32 = arith.constant 0 : i32
    %c0_i32_0 = arith.constant 0 : i32
    %c0_i32_1 = arith.constant 0 : i32
    return %c0_i32, %c0_i32_0 : i32, i32
  }
  func.func @transform_3(%arg0: i32) -> (i32, i32) {
    %c0_i32 = arith.constant 0 : i32
    %c0_i32_0 = arith.constant 0 : i32
    %c0_i32_1 = arith.constant 0 : i32
    return %c0_i32, %c0_i32_0 : i32, i32
  }
  func.func @transform_4(%arg0: i32) -> (i32, i32) {
    %c0_i32 = arith.constant 0 : i32
    %c0_i32_0 = arith.constant 0 : i32
    %c0_i32_1 = arith.constant 0 : i32
    return %c0_i32, %c0_i32_0 : i32, i32
  }
  func.func @transform_5(%arg0: i32) -> (i32, i32) {
    %c0_i32 = arith.constant 0 : i32
    %c0_i32_0 = arith.constant 0 : i32
    return %arg0, %c0_i32 : i32, i32
  }
}

</mosaic_0001>

<bundles_post_ra>
// kernel: tpu_custom_call.1
= control target key start
LH: loop header
LB: loop body
LE: loop exit
PB: predicated region body
PF: predicated region fallthrough
CT: control target
= control target key end

     0   :  { %10 = vsyncpa [#allocation3], 0  ;;  %s1156_s0 = inlined_call_operand.hbm [shape: f32[256,128], index: 0, kind: input, shape index: {}]   ;;  %s1157_s1 = inlined_call_operand.hbm [shape: f32[128,128], index: 1, kind: input, shape index: {}]   ;;  %s1158_s2 = inlined_call_operand.vmem [shape: f32[1,128], index: 2, kind: input, shape index: {}]   ;;  %s1159_s3 = inlined_call_operand.hbm [shape: f32[128,128], index: 3, kind: input, shape index: {}]   ;;  %s1160_s4 = inlined_call_operand.vmem [shape: f32[1,128], index: 4, kind: input, shape index: {}]   ;;  %s1161_s5 = inlined_call_operand.hbm [shape: f32[256,128], index: 5, kind: output, shape index: {}]  }
   0x1   :  { %11 = vsyncpa [#allocation6], 0 }
   0x2   :  { %12 = vsyncpa [#allocation4], 0  ;;  %s1022_s18 = smov [#allocation5]   ;;  %s1023_s20 = smov [#allocation2]  }
   0x3   :  { %s30_s19 = sshll.u32 %s1022_s18, 4  ;;  %s18_s21 = sshll.u32 %s1023_s20, 4  ;;  %s31_s19 = int_to_ptr.vmem [resolvable:$true] %s30_s19  ;;  %s19_s21 = int_to_ptr.vmem [resolvable:$true] %s18_s21 }
   0x4   :  { %s944_s22 = scalar_lea.vmem %s31_s19, 2048  ;;  %p949_p1 = scmp.lt.s32.totalorder %s31_s19, %s31_s19 }
   0x5   :  { %p945_p0 = scmp.ne.s32.totalorder %s31_s19, %s944_s22  ;;  %p950_p2 = scmp.lt.s32.totalorder %s944_s22, %s944_s22 }
   0x7   :  { %p951_p3 = por %p950_p2, %p949_p1 }
   0x9   :  { %p952_p4 = pnand %p951_p3, %p945_p0 }
   0xb   :  { %955 = shalt.err (!%p952_p4)
}
   0xc   :  { %s1024_s23 = smov 128   ;;  %s1025_s24 = smov 8  }
   0xd   :  { %36 = dma.hbm_to_vmem [thread:$0]  %s1157_s1, 2048, %s31_s19, [#allocation6], %s1024_s23, %s1024_s23, %s1025_s24  }
   0xe   :  { %s964_s27 = scalar_lea.vmem %s19_s21, 4096  ;;  %p969_p6 = scmp.lt.s32.totalorder %s19_s21, %s19_s21 }
   0xf   :  { %p965_p5 = scmp.ne.s32.totalorder %s19_s21, %s964_s27  ;;  %p970_p7 = scmp.lt.s32.totalorder %s964_s27, %s964_s27 }
  0x11   :  { %p971_p8 = por %p970_p7, %p969_p6 }
  0x13   :  { %p972_p9 = pnand %p971_p8, %p965_p5 }
  0x15   :  { %975 = shalt.err (!%p972_p9)
}
  0x16   :  { %24 = dma.hbm_to_vmem [thread:$0]  %s1156_s0, 4096, %s19_s21, [#allocation3], %s1024_s23, %s1024_s23, %s1025_s24  }
  0x17   :  { %s1026_s30 = smov [#allocation7]  }
  0x18   :  { %s44_s6 = sshll.u32 %s1026_s30, 4  ;;  %s45_s6 = int_to_ptr.vmem [resolvable:$true] %s44_s6 }
  0x19   :  { %s984_s7 = scalar_lea.vmem %s45_s6, 2048  ;;  %p989_p11 = scmp.lt.s32.totalorder %s45_s6, %s45_s6 }
  0x1a   :  { %p985_p10 = scmp.ne.s32.totalorder %s45_s6, %s984_s7  ;;  %p990_p12 = scmp.lt.s32.totalorder %s984_s7, %s984_s7 }
  0x1c   :  { %p991_p13 = por %p990_p12, %p989_p11 }
  0x1e   :  { %p992_p0 = pnand %p991_p13, %p985_p10 }
  0x20   :  { %995 = shalt.err (!%p992_p0)
}
  0x21   :  { %50 = dma.hbm_to_vmem [thread:$0]  %s1159_s3, 2048, %s45_s6, [#allocation6], %s1024_s23, %s1024_s23, %s1025_s24  }
  0x22   :  { %1016 = dma.done.wait [#allocation3], 4096  }
  0x23   :  { %1017 = vsyncadd [#allocation3], 4294963200 }
  0x24   :  { %1018 = dma.done.wait [#allocation6], 4096  }
  0x25   :  { %1019 = vsyncadd [#allocation6], 4294963200  ;;  %v111_v0 = vld [vmem:[#allocation5 + $0x78] sm:$0xff]  ;;  %v110_v1 = vld [vmem:[#allocation5 + $0x70] sm:$0xff] }
  0x26   :  { %770 = vmatprep.subr.mxu0 %v111_v0  ;;  %v109_v2 = vld [vmem:[#allocation5 + $0x68] sm:$0xff]  ;;  %v108_v3 = vld [vmem:[#allocation5 + $0x60] sm:$0xff]  ;;  %v107_v5 = vld [vmem:[#allocation5 + $0x58] sm:$0xff] }
  0x27   :  { %771 = vmatpush3.msra.mxu0 %v111_v0  ;;  %v62_v4 = vld [vmem:[#allocation2] sm:$0xff]  ;;  %v106_v6 = vld [vmem:[#allocation5 + $0x50] sm:$0xff]  ;;  %v105_v7 = vld [vmem:[#allocation5 + $0x48] sm:$0xff] }
  0x28   :  { %772 = vmatprep.subr.mxu0 %v110_v1  ;;  %802 = vmatprep.mubr.f32.mxu0 %v62_v4  ;;  %v104_v8 = vld [vmem:[#allocation5 + $0x40] sm:$0xff]  ;;  %v103_v9 = vld [vmem:[#allocation5 + $0x38] sm:$0xff]  ;;  %v102_v10 = vld [vmem:[#allocation5 + $0x30] sm:$0xff] }
  0x29   :  { %773 = vmatpush3.msra.mxu0 %v110_v1  ;;  %v390_v11 = vld [vmem:[#allocation7 + $0x78] sm:$0xff]  ;;  %v389_v12 = vld [vmem:[#allocation7 + $0x70] sm:$0xff]  ;;  %v101_v13 = vld [vmem:[#allocation5 + $0x28] sm:$0xff] }
  0x2a   :  { %774 = vmatprep.subr.mxu0 %v109_v2  ;;  %850 = vmatprep.subr.mxu1 %v390_v11  ;;  %v388_v14 = vld [vmem:[#allocation7 + $0x68] sm:$0xff]  ;;  %v100_v15 = vld [vmem:[#allocation5 + $0x20] sm:$0xff]  ;;  %v99_v17 = vld [vmem:[#allocation5 + $0x18] sm:$0xff] }
  0x2b   :  { %775 = vmatpush3.msra.mxu0 %v109_v2  ;;  %851 = vmatpush3.msra.mxu1 %v390_v11  ;;  %v387_v16 = vld [vmem:[#allocation7 + $0x60] sm:$0xff]  ;;  %v386_v18 = vld [vmem:[#allocation7 + $0x58] sm:$0xff]  ;;  %v98_v19 = vld [vmem:[#allocation5 + $0x10] sm:$0xff] }
  0x2c   :  { %776 = vmatprep.subr.mxu0 %v108_v3  ;;  %852 = vmatprep.subr.mxu1 %v389_v12  ;;  %v385_v20 = vld [vmem:[#allocation7 + $0x50] sm:$0xff]  ;;  %v97_v21 = vld [vmem:[#allocation5 + $0x8] sm:$0xff]  ;;  %v96_v23 = vld [vmem:[#allocation5] sm:$0xff] }
  0x2d   :  { %777 = vmatpush3.msra.mxu0 %v108_v3  ;;  %853 = vmatpush3.msra.mxu1 %v389_v12  ;;  %v384_v22 = vld [vmem:[#allocation7 + $0x48] sm:$0xff]  ;;  %v383_v24 = vld [vmem:[#allocation7 + $0x40] sm:$0xff]  ;;  %v382_v26 = vld [vmem:[#allocation7 + $0x38] sm:$0xff] }
  0x2e   :  { %778 = vmatprep.subr.mxu0 %v107_v5  ;;  %854 = vmatprep.subr.mxu1 %v388_v14  ;;  %v63_v25 = vld [vmem:[#allocation2 + $0x8] sm:$0xff]  ;;  %v64_v27 = vld [vmem:[#allocation2 + $0x10] sm:$0xff]  ;;  %v65_v29 = vld [vmem:[#allocation2 + $0x18] sm:$0xff] }
  0x2f   :  { %779 = vmatpush3.msra.mxu0 %v107_v5  ;;  %855 = vmatpush3.msra.mxu1 %v388_v14  ;;  %v381_v28 = vld [vmem:[#allocation7 + $0x30] sm:$0xff]  ;;  %v380_v30 = vld [vmem:[#allocation7 + $0x28] sm:$0xff]  ;;  %v66_v31 = vld [vmem:[#allocation2 + $0x20] sm:$0xff] }
  0x30   :  { %780 = vmatprep.subr.mxu0 %v106_v6  ;;  %856 = vmatprep.subr.mxu1 %v387_v16  ;;  %v379_v32 = vld [vmem:[#allocation7 + $0x20] sm:$0xff]  ;;  %v67_v33 = vld [vmem:[#allocation2 + $0x28] sm:$0xff]  ;;  %v68_v34 = vld [vmem:[#allocation2 + $0x30] sm:$0xff] }
  0x31   :  { %781 = vmatpush3.msra.mxu0 %v106_v6  ;;  %857 = vmatpush3.msra.mxu1 %v387_v16  ;;  %v69_v35 = vld [vmem:[#allocation2 + $0x38] sm:$0xff]  ;;  %v70_v36 = vld [vmem:[#allocation2 + $0x40] sm:$0xff]  ;;  %v71_v37 = vld [vmem:[#allocation2 + $0x48] sm:$0xff] }
  0x32   :  { %782 = vmatprep.subr.mxu0 %v105_v7  ;;  %858 = vmatprep.subr.mxu1 %v386_v18  ;;  %v72_v38 = vld [vmem:[#allocation2 + $0x50] sm:$0xff]  ;;  %v73_v39 = vld [vmem:[#allocation2 + $0x58] sm:$0xff]  ;;  %v74_v40 = vld [vmem:[#allocation2 + $0x60] sm:$0xff] }
  0x33   :  { %783 = vmatpush3.msra.mxu0 %v105_v7  ;;  %859 = vmatpush3.msra.mxu1 %v386_v18  ;;  %v75_v41 = vld [vmem:[#allocation2 + $0x68] sm:$0xff]  ;;  %v76_v42 = vld [vmem:[#allocation2 + $0x70] sm:$0xff]  ;;  %v77_v43 = vld [vmem:[#allocation2 + $0x78] sm:$0xff] }
  0x34   :  { %784 = vmatprep.subr.mxu0 %v104_v8  ;;  %860 = vmatprep.subr.mxu1 %v385_v20  ;;  %v78_v44 = vld [vmem:[#allocation2 + $0x80] sm:$0xff]  ;;  %v79_v45 = vld [vmem:[#allocation2 + $0x88] sm:$0xff]  ;;  %v80_v46 = vld [vmem:[#allocation2 + $0x90] sm:$0xff] }
  0x35   :  { %785 = vmatpush3.msra.mxu0 %v104_v8  ;;  %861 = vmatpush3.msra.mxu1 %v385_v20  ;;  %v81_v47 = vld [vmem:[#allocation2 + $0x98] sm:$0xff]  ;;  %v82_v48 = vld [vmem:[#allocation2 + $0xa0] sm:$0xff]  ;;  %v83_v49 = vld [vmem:[#allocation2 + $0xa8] sm:$0xff] }
  0x36   :  { %786 = vmatprep.subr.mxu0 %v103_v9  ;;  %862 = vmatprep.subr.mxu1 %v384_v22  ;;  %v84_v50 = vld [vmem:[#allocation2 + $0xb0] sm:$0xff]  ;;  %v85_v51 = vld [vmem:[#allocation2 + $0xb8] sm:$0xff]  ;;  %v86_v52 = vld [vmem:[#allocation2 + $0xc0] sm:$0xff] }
  0x37   :  { %787 = vmatpush3.msra.mxu0 %v103_v9  ;;  %863 = vmatpush3.msra.mxu1 %v384_v22  ;;  %v87_v53 = vld [vmem:[#allocation2 + $0xc8] sm:$0xff]  ;;  %v88_v54 = vld [vmem:[#allocation2 + $0xd0] sm:$0xff]  ;;  %v89_v55 = vld [vmem:[#allocation2 + $0xd8] sm:$0xff] }
  0x38   :  { %788 = vmatprep.subr.mxu0 %v102_v10  ;;  %864 = vmatprep.subr.mxu1 %v383_v24  ;;  %v90_v56 = vld [vmem:[#allocation2 + $0xe0] sm:$0xff]  ;;  %v91_v57 = vld [vmem:[#allocation2 + $0xe8] sm:$0xff]  ;;  %v92_v58 = vld [vmem:[#allocation2 + $0xf0] sm:$0xff] }
  0x39   :  { %789 = vmatpush3.msra.mxu0 %v102_v10  ;;  %865 = vmatpush3.msra.mxu1 %v383_v24  ;;  %v93_v59 = vld [vmem:[#allocation2 + $0xf8] sm:$0xff]  ;;  %v377_v61 = vld [vmem:[#allocation7 + $0x10] sm:$0xff]  ;;  %v376_v62 = vld [vmem:[#allocation7 + $0x8] sm:$0xff] }
  0x3a   :  { %790 = vmatprep.subr.mxu0 %v101_v13  ;;  %866 = vmatprep.subr.mxu1 %v382_v26  ;;  %v378_v60 = vld [vmem:[#allocation7 + $0x18] sm:$0xff]  ;;  %v375_v63 = vld [vmem:[#allocation7] sm:$0xff] }
  0x3b   :  { %791 = vmatpush3.msra.mxu0 %v101_v13  ;;  %867 = vmatpush3.msra.mxu1 %v382_v26  ;;  %v1079_v0 = vld [vmem:[%s1158_s2] ss:$0 sm:$0xff] }
  0x3c   :  { %792 = vmatprep.subr.mxu0 %v100_v15  ;;  %868 = vmatprep.subr.mxu1 %v381_v28 }
  0x3d   :  { %793 = vmatpush3.msra.mxu0 %v100_v15  ;;  %869 = vmatpush3.msra.mxu1 %v381_v28 }
  0x3e   :  { %794 = vmatprep.subr.mxu0 %v99_v17  ;;  %870 = vmatprep.subr.mxu1 %v380_v30 }
  0x3f   :  { %795 = vmatpush3.msra.mxu0 %v99_v17  ;;  %871 = vmatpush3.msra.mxu1 %v380_v30 }
  0x40   :  { %796 = vmatprep.subr.mxu0 %v98_v19  ;;  %872 = vmatprep.subr.mxu1 %v379_v32 }
  0x41   :  { %797 = vmatpush3.msra.mxu0 %v98_v19  ;;  %873 = vmatpush3.msra.mxu1 %v379_v32 }
  0x42   :  { %798 = vmatprep.subr.mxu0 %v97_v21  ;;  %874 = vmatprep.subr.mxu1 %v378_v60 }
  0x43   :  { %799 = vmatpush3.msra.mxu0 %v97_v21  ;;  %875 = vmatpush3.msra.mxu1 %v378_v60 }
  0x44   :  { %800 = vmatprep.subr.mxu0 %v96_v23  ;;  %876 = vmatprep.subr.mxu1 %v377_v61 }
  0x45   :  { %801 = vmatpush3.msra.mxu0 %v96_v23  ;;  %877 = vmatpush3.msra.mxu1 %v377_v61 }
  0x46   :  { %803 = vmatmul.mubr.f32.vlgmr.msra.gmra.mxu0 %v63_v25  ;;  %878 = vmatprep.subr.mxu1 %v376_v62 }
  0x47   :  { %805 = vmatprep.mubr.f32.mxu0 %v64_v27  ;;  %879 = vmatpush3.msra.mxu1 %v376_v62 }
  0x48   :  { %880 = vmatprep.subr.mxu1 %v375_v63 }
  0x49   :  { %881 = vmatpush3.msra.mxu1 %v375_v63 }
  0x4a   :  { %806 = vmatmul.mubr.f32.gmra.mxu0 %v65_v29 }
  0x4b   :  { %808 = vmatprep.mubr.f32.mxu0 %v66_v31 }
  0x4e   :  { %809 = vmatmul.mubr.f32.gmra.mxu0 %v67_v33 }
  0x4f   :  { %811 = vmatprep.mubr.f32.mxu0 %v68_v34 }
  0x52   :  { %812 = vmatmul.mubr.f32.gmra.mxu0 %v69_v35 }
  0x53   :  { %814 = vmatprep.mubr.f32.mxu0 %v70_v36 }
  0x56   :  { %815 = vmatmul.mubr.f32.gmra.mxu0 %v71_v37 }
  0x57   :  { %817 = vmatprep.mubr.f32.mxu0 %v72_v38 }
  0x5a   :  { %818 = vmatmul.mubr.f32.gmra.mxu0 %v73_v39 }
  0x5b   :  { %820 = vmatprep.mubr.f32.mxu0 %v74_v40 }
  0x5e   :  { %821 = vmatmul.mubr.f32.gmra.mxu0 %v75_v41 }
  0x5f   :  { %823 = vmatprep.mubr.f32.mxu0 %v76_v42 }
  0x62   :  { %824 = vmatmul.mubr.f32.gmra.mxu0 %v77_v43 }
  0x63   :  { %826 = vmatprep.mubr.f32.mxu0 %v78_v44 }
  0x66   :  { %827 = vmatmul.mubr.f32.gmra.mxu0 %v79_v45 }
  0x67   :  { %829 = vmatprep.mubr.f32.mxu0 %v80_v46 }
  0x6a   :  { %830 = vmatmul.mubr.f32.gmra.mxu0 %v81_v47 }
  0x6b   :  { %832 = vmatprep.mubr.f32.mxu0 %v82_v48 }
  0x6e   :  { %833 = vmatmul.mubr.f32.gmra.mxu0 %v83_v49 }
  0x6f   :  { %835 = vmatprep.mubr.f32.mxu0 %v84_v50 }
  0x72   :  { %836 = vmatmul.mubr.f32.gmra.mxu0 %v85_v51 }
  0x73   :  { %838 = vmatprep.mubr.f32.mxu0 %v86_v52 }
  0x76   :  { %839 = vmatmul.mubr.f32.gmra.mxu0 %v87_v53 }
  0x77   :  { %841 = vmatprep.mubr.f32.mxu0 %v88_v54 }
  0x7a   :  { %842 = vmatmul.mubr.f32.gmra.mxu0 %v89_v55 }
  0x7b   :  { %844 = vmatprep.mubr.f32.mxu0 %v90_v56 }
  0x7e   :  { %845 = vmatmul.mubr.f32.gmra.mxu0 %v91_v57 }
  0x7f   :  { %847 = vmatprep.mubr.f32.mxu0 %v92_v58 }
  0x82   :  { %848 = vmatmul.mubr.f32.gmra.mxu0 %v93_v59 }
 0x106   :  { %v804_v1 = vpop.f32.mrf.mxu0 }
 0x107   :  { %v190_v2 = vadd.f32 %v804_v1, %v1079_v0 }
 0x108   :  { %v184_v3 = vpop.f32.mrf.mxu0 }
 0x109   :  { %v185_v4 = vadd.f32 %v1079_v0, %v184_v3  ;;  %v344_v7 = vmax.f32 %v190_v2, 0.0 }
 0x10a   :  { %v807_v5 = vpop.f32.mrf.mxu0 }
 0x10b   :  { %v343_v6 = vmax.f32 %v185_v4, 0.0  ;;  %v200_v8 = vadd.f32 %v807_v5, %v1079_v0 }
 0x10c   :  { %v194_v9 = vpop.f32.mrf.mxu0 }
 0x10d   :  { %v195_v10 = vadd.f32 %v1079_v0, %v194_v9  ;;  %882 = vmatprep.mubr.f32.mxu1 %v343_v6  ;;  %v346_v13 = vmax.f32 %v200_v8, 0.0 }
 0x10e   :  { %v810_v11 = vpop.f32.mrf.mxu0  ;;  %883 = vmatmul.mubr.f32.vlgmr.msra.gmra.mxu1 %v344_v7 }
 0x10f   :  { %v345_v12 = vmax.f32 %v195_v10, 0.0  ;;  %v210_v14 = vadd.f32 %v810_v11, %v1079_v0 }
 0x110   :  { %v204_v15 = vpop.f32.mrf.mxu0 }
 0x111   :  { %v205_v16 = vadd.f32 %v1079_v0, %v204_v15  ;;  %885 = vmatprep.mubr.f32.mxu1 %v345_v12  ;;  %v348_v19 = vmax.f32 %v210_v14, 0.0 }
 0x112   :  { %v813_v17 = vpop.f32.mrf.mxu0  ;;  %886 = vmatmul.mubr.f32.gmra.mxu1 %v346_v13 }
 0x113   :  { %v347_v18 = vmax.f32 %v205_v16, 0.0  ;;  %v220_v20 = vadd.f32 %v813_v17, %v1079_v0 }
 0x114   :  { %v214_v21 = vpop.f32.mrf.mxu0 }
 0x115   :  { %v215_v22 = vadd.f32 %v1079_v0, %v214_v21  ;;  %888 = vmatprep.mubr.f32.mxu1 %v347_v18  ;;  %v350_v25 = vmax.f32 %v220_v20, 0.0 }
 0x116   :  { %v816_v23 = vpop.f32.mrf.mxu0  ;;  %889 = vmatmul.mubr.f32.gmra.mxu1 %v348_v19 }
 0x117   :  { %v349_v24 = vmax.f32 %v215_v22, 0.0  ;;  %v230_v26 = vadd.f32 %v816_v23, %v1079_v0 }
 0x118   :  { %v224_v27 = vpop.f32.mrf.mxu0 }
 0x119   :  { %v225_v28 = vadd.f32 %v1079_v0, %v224_v27  ;;  %891 = vmatprep.mubr.f32.mxu1 %v349_v24  ;;  %v352_v31 = vmax.f32 %v230_v26, 0.0 }
 0x11a   :  { %v819_v29 = vpop.f32.mrf.mxu0  ;;  %892 = vmatmul.mubr.f32.gmra.mxu1 %v350_v25 }
 0x11b   :  { %v351_v30 = vmax.f32 %v225_v28, 0.0  ;;  %v240_v32 = vadd.f32 %v819_v29, %v1079_v0 }
 0x11c   :  { %v234_v33 = vpop.f32.mrf.mxu0 }
 0x11d   :  { %v235_v34 = vadd.f32 %v1079_v0, %v234_v33  ;;  %894 = vmatprep.mubr.f32.mxu1 %v351_v30  ;;  %v354_v37 = vmax.f32 %v240_v32, 0.0 }
 0x11e   :  { %v822_v35 = vpop.f32.mrf.mxu0  ;;  %895 = vmatmul.mubr.f32.gmra.mxu1 %v352_v31 }
 0x11f   :  { %v353_v36 = vmax.f32 %v235_v34, 0.0  ;;  %v250_v38 = vadd.f32 %v822_v35, %v1079_v0  ;;  %v1116_v34 = vld [vmem:[%s1160_s4] ss:$0 sm:$0xff]  ;;  %s1027_s4 = smov [#allocation8]  }
 0x120   :  { %v244_v39 = vpop.f32.mrf.mxu0  ;;  %s659_s10 = sshll.u32 %s1027_s4, 4  ;;  %s660_s10 = int_to_ptr.vmem [resolvable:$true] %s659_s10 }
 0x121   :  { %v245_v40 = vadd.f32 %v1079_v0, %v244_v39  ;;  %897 = vmatprep.mubr.f32.mxu1 %v353_v36  ;;  %v356_v43 = vmax.f32 %v250_v38, 0.0  ;;  %s996_s11 = scalar_lea.vmem %s660_s10, 4096  ;;  %p1001_p2 = scmp.lt.s32.totalorder %s660_s10, %s660_s10 }
 0x122   :  { %v825_v41 = vpop.f32.mrf.mxu0  ;;  %898 = vmatmul.mubr.f32.gmra.mxu1 %v354_v37  ;;  %p997_p1 = scmp.ne.s32.totalorder %s660_s10, %s996_s11  ;;  %p1002_p3 = scmp.lt.s32.totalorder %s996_s11, %s996_s11 }
 0x123   :  { %v355_v42 = vmax.f32 %v245_v40, 0.0  ;;  %v260_v44 = vadd.f32 %v825_v41, %v1079_v0 }
 0x124   :  { %v254_v45 = vpop.f32.mrf.mxu0  ;;  %p1003_p4 = por %p1002_p3, %p1001_p2 }
 0x125   :  { %v255_v46 = vadd.f32 %v1079_v0, %v254_v45  ;;  %900 = vmatprep.mubr.f32.mxu1 %v355_v42  ;;  %v358_v49 = vmax.f32 %v260_v44, 0.0 }
 0x126   :  { %v828_v47 = vpop.f32.mrf.mxu0  ;;  %901 = vmatmul.mubr.f32.gmra.mxu1 %v356_v43  ;;  %p1004_p5 = pnand %p1003_p4, %p997_p1 }
 0x127   :  { %v357_v48 = vmax.f32 %v255_v46, 0.0  ;;  %v270_v50 = vadd.f32 %v828_v47, %v1079_v0 }
 0x128   :  { %v264_v51 = vpop.f32.mrf.mxu0 }
 0x129   :  { %v265_v52 = vadd.f32 %v1079_v0, %v264_v51  ;;  %903 = vmatprep.mubr.f32.mxu1 %v357_v48  ;;  %v360_v55 = vmax.f32 %v270_v50, 0.0 }
 0x12a   :  { %v831_v53 = vpop.f32.mrf.mxu0  ;;  %904 = vmatmul.mubr.f32.gmra.mxu1 %v358_v49 }
 0x12b   :  { %v359_v54 = vmax.f32 %v265_v52, 0.0  ;;  %v280_v56 = vadd.f32 %v831_v53, %v1079_v0 }
 0x12c   :  { %v274_v57 = vpop.f32.mrf.mxu0 }
 0x12d   :  { %v275_v58 = vadd.f32 %v1079_v0, %v274_v57  ;;  %906 = vmatprep.mubr.f32.mxu1 %v359_v54  ;;  %v362_v61 = vmax.f32 %v280_v56, 0.0 }
 0x12e   :  { %v834_v59 = vpop.f32.mrf.mxu0  ;;  %907 = vmatmul.mubr.f32.gmra.mxu1 %v360_v55 }
 0x12f   :  { %v361_v60 = vmax.f32 %v275_v58, 0.0  ;;  %v290_v62 = vadd.f32 %v834_v59, %v1079_v0 }
 0x130   :  { %v284_v63 = vpop.f32.mrf.mxu0 }
 0x131   :  { %v285_v1 = vadd.f32 %v1079_v0, %v284_v63  ;;  %909 = vmatprep.mubr.f32.mxu1 %v361_v60  ;;  %v364_v4 = vmax.f32 %v290_v62, 0.0 }
 0x132   :  { %v837_v2 = vpop.f32.mrf.mxu0  ;;  %910 = vmatmul.mubr.f32.gmra.mxu1 %v362_v61 }
 0x133   :  { %v363_v3 = vmax.f32 %v285_v1, 0.0  ;;  %v300_v5 = vadd.f32 %v837_v2, %v1079_v0 }
 0x134   :  { %v294_v6 = vpop.f32.mrf.mxu0 }
 0x135   :  { %v295_v7 = vadd.f32 %v1079_v0, %v294_v6  ;;  %912 = vmatprep.mubr.f32.mxu1 %v363_v3  ;;  %v366_v10 = vmax.f32 %v300_v5, 0.0 }
 0x136   :  { %v840_v8 = vpop.f32.mrf.mxu0  ;;  %913 = vmatmul.mubr.f32.gmra.mxu1 %v364_v4 }
 0x137   :  { %v365_v9 = vmax.f32 %v295_v7, 0.0  ;;  %v310_v11 = vadd.f32 %v840_v8, %v1079_v0 }
 0x138   :  { %v304_v12 = vpop.f32.mrf.mxu0 }
 0x139   :  { %v305_v13 = vadd.f32 %v1079_v0, %v304_v12  ;;  %915 = vmatprep.mubr.f32.mxu1 %v365_v9  ;;  %v368_v16 = vmax.f32 %v310_v11, 0.0 }
 0x13a   :  { %v843_v14 = vpop.f32.mrf.mxu0  ;;  %916 = vmatmul.mubr.f32.gmra.mxu1 %v366_v10 }
 0x13b   :  { %v367_v15 = vmax.f32 %v305_v13, 0.0  ;;  %v320_v17 = vadd.f32 %v843_v14, %v1079_v0 }
 0x13c   :  { %v314_v18 = vpop.f32.mrf.mxu0 }
 0x13d   :  { %v315_v19 = vadd.f32 %v1079_v0, %v314_v18  ;;  %918 = vmatprep.mubr.f32.mxu1 %v367_v15  ;;  %v370_v22 = vmax.f32 %v320_v17, 0.0 }
 0x13e   :  { %v846_v20 = vpop.f32.mrf.mxu0  ;;  %919 = vmatmul.mubr.f32.gmra.mxu1 %v368_v16 }
 0x13f   :  { %v369_v21 = vmax.f32 %v315_v19, 0.0  ;;  %v330_v23 = vadd.f32 %v846_v20, %v1079_v0 }
 0x140   :  { %v324_v24 = vpop.f32.mrf.mxu0 }
 0x141   :  { %v325_v25 = vadd.f32 %v1079_v0, %v324_v24  ;;  %921 = vmatprep.mubr.f32.mxu1 %v369_v21  ;;  %v372_v28 = vmax.f32 %v330_v23, 0.0 }
 0x142   :  { %v849_v26 = vpop.f32.mrf.mxu0  ;;  %922 = vmatmul.mubr.f32.gmra.mxu1 %v370_v22 }
 0x143   :  { %v371_v27 = vmax.f32 %v325_v25, 0.0  ;;  %v340_v29 = vadd.f32 %v849_v26, %v1079_v0 }
 0x144   :  { %v334_v30 = vpop.f32.mrf.mxu0 }
 0x145   :  { %v335_v31 = vadd.f32 %v1079_v0, %v334_v30  ;;  %924 = vmatprep.mubr.f32.mxu1 %v371_v27  ;;  %v374_v33 = vmax.f32 %v340_v29, 0.0 }
 0x146   :  { %925 = vmatmul.mubr.f32.gmra.mxu1 %v372_v28 }
 0x147   :  { %v373_v32 = vmax.f32 %v335_v31, 0.0 }
 0x149   :  { %927 = vmatprep.mubr.f32.mxu1 %v373_v32 }
 0x14a   :  { %928 = vmatmul.mubr.f32.gmra.mxu1 %v374_v33 }
 0x1ce   :  { %v884_v35 = vpop.f32.mrf.mxu1 }
 0x1cf   :  { %v469_v36 = vadd.f32 %v884_v35, %v1116_v34 }
 0x1d0   :  { %v463_v37 = vpop.f32.mrf.mxu1 }
 0x1d1   :  { %623 = vst [vmem:[#allocation8 + $0x8] sm:$0xff] %v469_v36  ;;  %v464_v38 = vadd.f32 %v1116_v34, %v463_v37 }
 0x1d2   :  { %v887_v39 = vpop.f32.mrf.mxu1 }
 0x1d3   :  { %622 = vst [vmem:[#allocation8] sm:$0xff] %v464_v38  ;;  %v479_v0 = vadd.f32 %v887_v39, %v1116_v34 }
 0x1d4   :  { %v473_v40 = vpop.f32.mrf.mxu1 }
 0x1d5   :  { %625 = vst [vmem:[#allocation8 + $0x18] sm:$0xff] %v479_v0  ;;  %v474_v41 = vadd.f32 %v1116_v34, %v473_v40 }
 0x1d6   :  { %v890_v42 = vpop.f32.mrf.mxu1 }
 0x1d7   :  { %624 = vst [vmem:[#allocation8 + $0x10] sm:$0xff] %v474_v41  ;;  %v489_v43 = vadd.f32 %v890_v42, %v1116_v34 }
 0x1d8   :  { %v483_v44 = vpop.f32.mrf.mxu1 }
 0x1d9   :  { %627 = vst [vmem:[#allocation8 + $0x28] sm:$0xff] %v489_v43  ;;  %v484_v45 = vadd.f32 %v1116_v34, %v483_v44 }
 0x1da   :  { %v893_v46 = vpop.f32.mrf.mxu1 }
 0x1db   :  { %626 = vst [vmem:[#allocation8 + $0x20] sm:$0xff] %v484_v45  ;;  %v499_v47 = vadd.f32 %v893_v46, %v1116_v34 }
 0x1dc   :  { %v493_v48 = vpop.f32.mrf.mxu1 }
 0x1dd   :  { %629 = vst [vmem:[#allocation8 + $0x38] sm:$0xff] %v499_v47  ;;  %v494_v49 = vadd.f32 %v1116_v34, %v493_v48 }
 0x1de   :  { %v896_v50 = vpop.f32.mrf.mxu1 }
 0x1df   :  { %628 = vst [vmem:[#allocation8 + $0x30] sm:$0xff] %v494_v49  ;;  %v509_v51 = vadd.f32 %v896_v50, %v1116_v34 }
 0x1e0   :  { %v503_v52 = vpop.f32.mrf.mxu1 }
 0x1e1   :  { %631 = vst [vmem:[#allocation8 + $0x48] sm:$0xff] %v509_v51  ;;  %v504_v53 = vadd.f32 %v1116_v34, %v503_v52 }
 0x1e2   :  { %v899_v54 = vpop.f32.mrf.mxu1 }
 0x1e3   :  { %630 = vst [vmem:[#allocation8 + $0x40] sm:$0xff] %v504_v53  ;;  %v519_v55 = vadd.f32 %v899_v54, %v1116_v34 }
 0x1e4   :  { %v513_v56 = vpop.f32.mrf.mxu1 }
 0x1e5   :  { %633 = vst [vmem:[#allocation8 + $0x58] sm:$0xff] %v519_v55  ;;  %v514_v57 = vadd.f32 %v1116_v34, %v513_v56 }
 0x1e6   :  { %v902_v58 = vpop.f32.mrf.mxu1 }
 0x1e7   :  { %632 = vst [vmem:[#allocation8 + $0x50] sm:$0xff] %v514_v57  ;;  %v529_v59 = vadd.f32 %v902_v58, %v1116_v34 }
 0x1e8   :  { %v523_v60 = vpop.f32.mrf.mxu1 }
 0x1e9   :  { %635 = vst [vmem:[#allocation8 + $0x68] sm:$0xff] %v529_v59  ;;  %v524_v61 = vadd.f32 %v1116_v34, %v523_v60 }
 0x1ea   :  { %v905_v62 = vpop.f32.mrf.mxu1 }
 0x1eb   :  { %634 = vst [vmem:[#allocation8 + $0x60] sm:$0xff] %v524_v61  ;;  %v539_v63 = vadd.f32 %v905_v62, %v1116_v34 }
 0x1ec   :  { %v533_v1 = vpop.f32.mrf.mxu1 }
 0x1ed   :  { %637 = vst [vmem:[#allocation8 + $0x78] sm:$0xff] %v539_v63  ;;  %v534_v2 = vadd.f32 %v1116_v34, %v533_v1 }
 0x1ee   :  { %v908_v3 = vpop.f32.mrf.mxu1 }
 0x1ef   :  { %636 = vst [vmem:[#allocation8 + $0x70] sm:$0xff] %v534_v2  ;;  %v549_v4 = vadd.f32 %v908_v3, %v1116_v34 }
 0x1f0   :  { %v543_v5 = vpop.f32.mrf.mxu1 }
 0x1f1   :  { %639 = vst [vmem:[#allocation8 + $0x88] sm:$0xff] %v549_v4  ;;  %v544_v6 = vadd.f32 %v1116_v34, %v543_v5 }
 0x1f2   :  { %v911_v7 = vpop.f32.mrf.mxu1 }
 0x1f3   :  { %638 = vst [vmem:[#allocation8 + $0x80] sm:$0xff] %v544_v6  ;;  %v559_v8 = vadd.f32 %v911_v7, %v1116_v34 }
 0x1f4   :  { %v553_v9 = vpop.f32.mrf.mxu1 }
 0x1f5   :  { %641 = vst [vmem:[#allocation8 + $0x98] sm:$0xff] %v559_v8  ;;  %v554_v10 = vadd.f32 %v1116_v34, %v553_v9 }
 0x1f6   :  { %v914_v11 = vpop.f32.mrf.mxu1 }
 0x1f7   :  { %640 = vst [vmem:[#allocation8 + $0x90] sm:$0xff] %v554_v10  ;;  %v569_v12 = vadd.f32 %v914_v11, %v1116_v34 }
 0x1f8   :  { %v563_v13 = vpop.f32.mrf.mxu1 }
 0x1f9   :  { %643 = vst [vmem:[#allocation8 + $0xa8] sm:$0xff] %v569_v12  ;;  %v564_v14 = vadd.f32 %v1116_v34, %v563_v13 }
 0x1fa   :  { %v917_v15 = vpop.f32.mrf.mxu1 }
 0x1fb   :  { %642 = vst [vmem:[#allocation8 + $0xa0] sm:$0xff] %v564_v14  ;;  %v579_v16 = vadd.f32 %v917_v15, %v1116_v34 }
 0x1fc   :  { %v573_v17 = vpop.f32.mrf.mxu1 }
 0x1fd   :  { %645 = vst [vmem:[#allocation8 + $0xb8] sm:$0xff] %v579_v16  ;;  %v574_v18 = vadd.f32 %v1116_v34, %v573_v17 }
 0x1fe   :  { %v920_v19 = vpop.f32.mrf.mxu1 }
 0x1ff   :  { %644 = vst [vmem:[#allocation8 + $0xb0] sm:$0xff] %v574_v18  ;;  %v589_v20 = vadd.f32 %v920_v19, %v1116_v34 }
 0x200   :  { %v583_v21 = vpop.f32.mrf.mxu1 }
 0x201   :  { %647 = vst [vmem:[#allocation8 + $0xc8] sm:$0xff] %v589_v20  ;;  %v584_v22 = vadd.f32 %v1116_v34, %v583_v21 }
 0x202   :  { %v923_v23 = vpop.f32.mrf.mxu1 }
 0x203   :  { %646 = vst [vmem:[#allocation8 + $0xc0] sm:$0xff] %v584_v22  ;;  %v599_v24 = vadd.f32 %v923_v23, %v1116_v34 }
 0x204   :  { %v593_v25 = vpop.f32.mrf.mxu1 }
 0x205   :  { %649 = vst [vmem:[#allocation8 + $0xd8] sm:$0xff] %v599_v24  ;;  %v594_v26 = vadd.f32 %v1116_v34, %v593_v25 }
 0x206   :  { %v926_v27 = vpop.f32.mrf.mxu1 }
 0x207   :  { %648 = vst [vmem:[#allocation8 + $0xd0] sm:$0xff] %v594_v26  ;;  %v609_v28 = vadd.f32 %v926_v27, %v1116_v34 }
 0x208   :  { %v603_v29 = vpop.f32.mrf.mxu1 }
 0x209   :  { %651 = vst [vmem:[#allocation8 + $0xe8] sm:$0xff] %v609_v28  ;;  %v604_v30 = vadd.f32 %v1116_v34, %v603_v29 }
 0x20a   :  { %v929_v31 = vpop.f32.mrf.mxu1 }
 0x20b   :  { %650 = vst [vmem:[#allocation8 + $0xe0] sm:$0xff] %v604_v30  ;;  %v619_v32 = vadd.f32 %v929_v31, %v1116_v34 }
 0x20c   :  { %v613_v33 = vpop.f32.mrf.mxu1 }
 0x20d   :  { %653 = vst [vmem:[#allocation8 + $0xf8] sm:$0xff] %v619_v32  ;;  %v614_v35 = vadd.f32 %v1116_v34, %v613_v33 }
 0x20f   :  { %652 = vst [vmem:[#allocation8 + $0xf0] sm:$0xff] %v614_v35 }
 0x210   :  { %1007 = shalt.err (!%p1004_p5)
}
 0x211   :  { %665 = dma.vmem_to_hbm [thread:$0]  %s660_s10, 4096, %s1161_s5, [#allocation4], %s1024_s23, %s1024_s23, %s1025_s24  }
 0x212   :  { %1020 = dma.done.wait [#allocation4], 4096  }
 0x213   :  { %1021 = vsyncadd [#allocation4], 4294963200 }
 0x214   :  { %669 = vsyncpa [#allocation3], 1 }
 0x215   :  { %670 = vsyncpa [#allocation6], 1 }
 0x216   :  { %671 = vsyncpa [#allocation4], 1 }

</bundles_post_ra>
